<compile_context>
chip_gen: v5e
topology: v5e:2x2
jax: 0.10.0
libtpu: 0.0.40
codegen_flags: <defaults>
</compile_context>

<pallas_src>
import math

import jax
import jax.numpy as jnp
from jax.experimental import pallas as pl
from jax.experimental.pallas import tpu as pltpu

EPS = 1e-5
SQRT_HALF = 0.7071067811865476  # sqrt(0.5)


def feature_transformer_kernel(x_ref, w_ref, p_ref, o_ref):
    # x_ref: (B_tile, Din)   activations, original (batch, features) layout
    # w_ref: (2, 2h, Din)    both layers' Linear weights, PyTorch (Dout, Din) layout
    # p_ref: (2h, 4)         packed BN affine params: columns [g0 | be0 | g1 | be1]
    # o_ref: (B_tile, Din)

    # Transpose once inside the kernel (2-vreg vxpose) so the batch sits on the
    # lane / MXU-N axis for both matmuls; avoids separate transpose HLO launches.
    xT = jnp.transpose(x_ref[...])                     # (Din, B)
    inv_b = jnp.float32(1.0 / xT.shape[1])             # full batch lives in this block
    two_h = w_ref.shape[1]
    h = two_h // 2

    for layer in range(2):                             # static unroll: two GLU layers
        w = w_ref[layer]                               # (2h, Din), static index
        g = p_ref[:, 2 * layer:2 * layer + 1]          # (2h, 1) gamma
        be = p_ref[:, 2 * layer + 1:2 * layer + 2]     # (2h, 1) beta

        # Single MXU matmul per layer: (2h, Din) @ (Din, B) -> (2h, B), f32 accumulate.
        y = jnp.dot(w, xT, preferred_element_type=jnp.float32)

        # Fused single-traversal batch statistics over the whole (2h, B) tile.
        # Biased variance, eps=1e-5 -> PyTorch BatchNorm1d training-mode semantics.
        mean = jnp.sum(y, axis=1, keepdims=True) * inv_b
        msq = jnp.sum(y * y, axis=1, keepdims=True) * inv_b
        var = msq - mean * mean
        a = g * jax.lax.rsqrt(var + EPS)               # gamma folded into the scale
        c = be - mean * a                              # beta - mean * scale
        yn = y * a + c                                 # one fused elementwise pass

        # GLU: value/gate halves are 8-aligned sublane slices (h == Din), free in vregs.
        val = yn[:h]                                   # (h, B)
        gate_lin = yn[h:]                              # (h, B)
        gate = 0.5 * (jnp.tanh(0.5 * gate_lin) + 1.0)  # sigmoid via tanh -> EUP

        xT = (xT + val * gate) * SQRT_HALF             # residual + sqrt(0.5) scale

    # Store directly in the module's (batch, features) layout (no external transpose).
    o_ref[...] = jnp.transpose(xT).astype(o_ref.dtype)


def feature_transformer(x, params):
    """x: (B, input_size) f32.  params in PyTorch-native layout:
    w: (Dout, Din), b: (Dout,), gamma/beta: (Dout,).  Returns (B, input_size)."""
    B, din = x.shape
    dout = params["w0"].shape[0]
    h = dout // 2
    assert h == din, "residual requires input_size == output_size // 2"

    # Pack parameters into two small arrays (one DMA each).  The Linear biases are
    # intentionally dropped: training-mode BN's mean subtraction cancels them exactly.
    w_packed = jnp.stack([params["w0"], params["w1"]])                  # (2, 2h, din)
    p_packed = jnp.stack([params["g0"], params["be0"],
                          params["g1"], params["be1"]], axis=1)         # (2h, 4)

    # Single resident batch tile today (BatchNorm statistics need the whole batch).
    b_tile = B
    grid = (pl.cdiv(B, b_tile),)

    return pl.pallas_call(
        feature_transformer_kernel,
        out_shape=jax.ShapeDtypeStruct((B, din), x.dtype),
        grid=grid,
        in_specs=[
            pl.BlockSpec((b_tile, din), lambda i: (i, 0)),       # activations (batch-tiled)
            pl.BlockSpec((2, dout, din), lambda i: (0, 0, 0)),   # weights: resident
            pl.BlockSpec((dout, 4), lambda i: (0, 0)),           # gamma/beta: resident
        ],
        out_specs=pl.BlockSpec((b_tile, din), lambda i: (i, 0)),
        compiler_params=pltpu.CompilerParams(
            dimension_semantics=("parallel",)),
        # TODO(synk): for large B, switch to a two-pass BN (accumulate sum/sumsq over an
        # "arbitrary" batch grid axis, then apply), bf16 matmul operands with f32
        # accumulation, 256-multiple batch tiles (128 on v5e), and explicit
        # vmem_limit_bytes sized for v7x's 64 MiB VMEM (~half the v5e/v6e tile).
    )(x, w_packed, p_packed)


def init_params(key, input_size, output_size):
    """Deterministic parameter init; weights stored in PyTorch layout (Dout, Din)."""
    ks = jax.random.split(key, 8)
    bound = 1.0 / math.sqrt(input_size)

    def linear(kw, kb):
        w = jax.random.uniform(kw, (output_size, input_size), jnp.float32, -bound, bound)
        b = jax.random.uniform(kb, (output_size,), jnp.float32, -bound, bound)
        return w, b

    w0, b0 = linear(ks[0], ks[1])
    w1, b1 = linear(ks[2], ks[3])
    # Non-trivial BN affine params so the gamma-folding / packing paths are exercised.
    g0 = jax.random.uniform(ks[4], (output_size,), jnp.float32, 0.5, 1.5)
    be0 = jax.random.uniform(ks[5], (output_size,), jnp.float32, -0.1, 0.1)
    g1 = jax.random.uniform(ks[6], (output_size,), jnp.float32, 0.5, 1.5)
    be1 = jax.random.uniform(ks[7], (output_size,), jnp.float32, -0.1, 0.1)
    return {"w0": w0, "b0": b0, "g0": g0, "be0": be0,
            "w1": w1, "b1": b1, "g1": g1, "be1": be1}


def feature_transformer_ref(x, p):
    """Pure-JAX reference mirroring the PyTorch forward exactly (with Linear bias,
    two-pass batch stats, true sigmoid)."""
    scale = jnp.float32(math.sqrt(0.5))

    def glu_layer(inp, w, b, g, be):
        y = inp @ w.T + b                                    # torch.nn.Linear
        mean = jnp.mean(y, axis=0, keepdims=True)            # BatchNorm1d, training mode
        var = jnp.mean(jnp.square(y - mean), axis=0, keepdims=True)
        yn = (y - mean) / jnp.sqrt(var + EPS) * g + be
        half = yn.shape[-1] // 2
        return yn[:, :half] * jax.nn.sigmoid(yn[:, half:])   # F.glu

    x = (x + glu_layer(x, p["w0"], p["b0"], p["g0"], p["be0"])) * scale
    x = (x + glu_layer(x, p["w1"], p["b1"], p["g1"], p["be1"])) * scale
    return x


if __name__ == "__main__":
    # Small shapes: input_size=16, output_size=32 (GLU halves it back to 16 so the
    # residual is well-defined).  batch=128 so the batch-on-lanes layout is lane-dense.
    B, INPUT_SIZE, OUTPUT_SIZE = 128, 16, 32

    key = jax.random.PRNGKey(0)
    kx, kp = jax.random.split(key)
    x = jax.random.normal(kx, (B, INPUT_SIZE), jnp.float32)
    params = init_params(kp, INPUT_SIZE, OUTPUT_SIZE)

    out = feature_transformer(x, params)
    out = jax.block_until_ready(out)

    ref = feature_transformer_ref(x, params)
    assert out.shape == (B, INPUT_SIZE)
    max_err = float(jnp.max(jnp.abs(out - ref)))
    assert jnp.allclose(out, ref, atol=1e-4, rtol=1e-4), (
        f"mismatch vs JAX reference (max abs err {max_err})")

    # TODO(synk): BatchNorm running-stat (momentum buffer) updates are a training
    # side-effect that does not affect the returned tensor; they are not emitted here.
    print("KERNEL_OK")
</pallas_src>

<mosaic_0001>
module attributes {stable_mosaic.version = 11 : i64} {
  func.func @feature_transformer_kernel(%arg0: i32, %arg1: memref<128x16xf32, #tpu.memory_space<vmem>>, %arg2: memref<2x32x16xf32, #tpu.memory_space<vmem>>, %arg3: memref<32x4xf32, #tpu.memory_space<vmem>>, %arg4: memref<128x16xf32, #tpu.memory_space<vmem>>) attributes {dimension_semantics = [#tpu.dimension_semantics<parallel>], iteration_bounds = array<i64: 1>, scalar_prefetch = 0 : i64, scratch_operands = 0 : i64, tpu.core_type = #tpu.core_type<tc>, window_params = [{transform_indices = @transform_0, window_bounds = array<i64: 128, 16>}, {pipeline_mode = #tpu.pipeline_mode<synchronous>, transform_indices = @transform_1, window_bounds = array<i64: 2, 32, 16>}, {pipeline_mode = #tpu.pipeline_mode<synchronous>, transform_indices = @transform_2, window_bounds = array<i64: 32, 4>}, {transform_indices = @transform_3, window_bounds = array<i64: 128, 16>}]} {
    %c0 = arith.constant 0 : index
    %c0_0 = arith.constant 0 : index
    %0 = vector.load %arg1[%c0, %c0_0] : memref<128x16xf32, #tpu.memory_space<vmem>>, vector<128x16xf32>
    %1 = tpu.transpose %0, [1, 0] : vector<128x16xf32> -> vector<16x128xf32>
    %c0_1 = arith.constant 0 : index
    %c0_2 = arith.constant 0 : index
    %c0_3 = arith.constant 0 : index
    %2 = vector.load %arg2[%c0_1, %c0_2, %c0_3] : memref<2x32x16xf32, #tpu.memory_space<vmem>>, vector<1x32x16xf32>
    %3 = vector.shape_cast %2 : vector<1x32x16xf32> to vector<32x16xf32>
    %c0_4 = arith.constant 0 : index
    %c0_5 = arith.constant 0 : index
    %4 = vector.load %arg3[%c0_4, %c0_5] : memref<32x4xf32, #tpu.memory_space<vmem>>, vector<32x1xf32>
    %c0_6 = arith.constant 0 : index
    %c1 = arith.constant 1 : index
    %5 = vector.load %arg3[%c0_6, %c1] : memref<32x4xf32, #tpu.memory_space<vmem>>, vector<32x1xf32>
    %cst = arith.constant dense<0.000000e+00> : vector<32x128xf32>
    %6 = tpu.matmul %3, %1, %cst {dimension_numbers = #tpu.dot_dimension_numbers<[1], [0], [0], [1], [0, 0, 1, 1], [], []>} : vector<32x16xf32>, vector<16x128xf32>, vector<32x128xf32> -> vector<32x128xf32>
    %cst_7 = arith.constant dense<0.000000e+00> : vector<32xf32>
    %7 = vector.multi_reduction <add>, %6, %cst_7 [1] : vector<32x128xf32> to vector<32xf32>
    %8 = vector.shape_cast %7 : vector<32xf32> to vector<32x1xf32>
    %cst_8 = arith.constant 7.812500e-03 : f32
    %9 = vector.broadcast %cst_8 : f32 to vector<32x1xf32>
    %10 = arith.mulf %8, %9 : vector<32x1xf32>
    %11 = arith.mulf %6, %6 : vector<32x128xf32>
    %cst_9 = arith.constant dense<0.000000e+00> : vector<32xf32>
    %12 = vector.multi_reduction <add>, %11, %cst_9 [1] : vector<32x128xf32> to vector<32xf32>
    %13 = vector.shape_cast %12 : vector<32xf32> to vector<32x1xf32>
    %cst_10 = arith.constant 7.812500e-03 : f32
    %14 = vector.broadcast %cst_10 : f32 to vector<32x1xf32>
    %15 = arith.mulf %13, %14 : vector<32x1xf32>
    %16 = arith.mulf %10, %10 : vector<32x1xf32>
    %17 = arith.subf %15, %16 : vector<32x1xf32>
    %cst_11 = arith.constant 9.99999974E-6 : f32
    %18 = vector.broadcast %cst_11 : f32 to vector<32x1xf32>
    %19 = arith.addf %17, %18 : vector<32x1xf32>
    %20 = math.rsqrt %19 : vector<32x1xf32>
    %21 = arith.mulf %4, %20 : vector<32x1xf32>
    %22 = arith.mulf %10, %21 : vector<32x1xf32>
    %23 = arith.subf %5, %22 : vector<32x1xf32>
    %24 = vector.broadcast %21 : vector<32x1xf32> to vector<32x128xf32>
    %25 = arith.mulf %6, %24 : vector<32x128xf32>
    %26 = vector.broadcast %23 : vector<32x1xf32> to vector<32x128xf32>
    %27 = arith.addf %25, %26 : vector<32x128xf32>
    %28 = vector.extract_strided_slice %27 {offsets = [0, 0], sizes = [16, 128], strides = [1, 1]} : vector<32x128xf32> to vector<16x128xf32>
    %29 = vector.extract_strided_slice %27 {offsets = [16, 0], sizes = [16, 128], strides = [1, 1]} : vector<32x128xf32> to vector<16x128xf32>
    %cst_12 = arith.constant 5.000000e-01 : f32
    %30 = vector.broadcast %cst_12 : f32 to vector<16x128xf32>
    %31 = arith.mulf %30, %29 : vector<16x128xf32>
    %32 = math.tanh %31 : vector<16x128xf32>
    %cst_13 = arith.constant 1.000000e+00 : f32
    %33 = vector.broadcast %cst_13 : f32 to vector<16x128xf32>
    %34 = arith.addf %32, %33 : vector<16x128xf32>
    %cst_14 = arith.constant 5.000000e-01 : f32
    %35 = vector.broadcast %cst_14 : f32 to vector<16x128xf32>
    %36 = arith.mulf %35, %34 : vector<16x128xf32>
    %37 = arith.mulf %28, %36 : vector<16x128xf32>
    %38 = arith.addf %1, %37 : vector<16x128xf32>
    %cst_15 = arith.constant 0.707106769 : f32
    %39 = vector.broadcast %cst_15 : f32 to vector<16x128xf32>
    %40 = arith.mulf %38, %39 : vector<16x128xf32>
    %c1_16 = arith.constant 1 : index
    %c0_17 = arith.constant 0 : index
    %c0_18 = arith.constant 0 : index
    %41 = vector.load %arg2[%c1_16, %c0_17, %c0_18] : memref<2x32x16xf32, #tpu.memory_space<vmem>>, vector<1x32x16xf32>
    %42 = vector.shape_cast %41 : vector<1x32x16xf32> to vector<32x16xf32>
    %c0_19 = arith.constant 0 : index
    %c2 = arith.constant 2 : index
    %43 = vector.load %arg3[%c0_19, %c2] : memref<32x4xf32, #tpu.memory_space<vmem>>, vector<32x1xf32>
    %c0_20 = arith.constant 0 : index
    %c3 = arith.constant 3 : index
    %44 = vector.load %arg3[%c0_20, %c3] : memref<32x4xf32, #tpu.memory_space<vmem>>, vector<32x1xf32>
    %cst_21 = arith.constant dense<0.000000e+00> : vector<32x128xf32>
    %45 = tpu.matmul %42, %40, %cst_21 {dimension_numbers = #tpu.dot_dimension_numbers<[1], [0], [0], [1], [0, 0, 1, 1], [], []>} : vector<32x16xf32>, vector<16x128xf32>, vector<32x128xf32> -> vector<32x128xf32>
    %cst_22 = arith.constant dense<0.000000e+00> : vector<32xf32>
    %46 = vector.multi_reduction <add>, %45, %cst_22 [1] : vector<32x128xf32> to vector<32xf32>
    %47 = vector.shape_cast %46 : vector<32xf32> to vector<32x1xf32>
    %cst_23 = arith.constant 7.812500e-03 : f32
    %48 = vector.broadcast %cst_23 : f32 to vector<32x1xf32>
    %49 = arith.mulf %47, %48 : vector<32x1xf32>
    %50 = arith.mulf %45, %45 : vector<32x128xf32>
    %cst_24 = arith.constant dense<0.000000e+00> : vector<32xf32>
    %51 = vector.multi_reduction <add>, %50, %cst_24 [1] : vector<32x128xf32> to vector<32xf32>
    %52 = vector.shape_cast %51 : vector<32xf32> to vector<32x1xf32>
    %cst_25 = arith.constant 7.812500e-03 : f32
    %53 = vector.broadcast %cst_25 : f32 to vector<32x1xf32>
    %54 = arith.mulf %52, %53 : vector<32x1xf32>
    %55 = arith.mulf %49, %49 : vector<32x1xf32>
    %56 = arith.subf %54, %55 : vector<32x1xf32>
    %cst_26 = arith.constant 9.99999974E-6 : f32
    %57 = vector.broadcast %cst_26 : f32 to vector<32x1xf32>
    %58 = arith.addf %56, %57 : vector<32x1xf32>
    %59 = math.rsqrt %58 : vector<32x1xf32>
    %60 = arith.mulf %43, %59 : vector<32x1xf32>
    %61 = arith.mulf %49, %60 : vector<32x1xf32>
    %62 = arith.subf %44, %61 : vector<32x1xf32>
    %63 = vector.broadcast %60 : vector<32x1xf32> to vector<32x128xf32>
    %64 = arith.mulf %45, %63 : vector<32x128xf32>
    %65 = vector.broadcast %62 : vector<32x1xf32> to vector<32x128xf32>
    %66 = arith.addf %64, %65 : vector<32x128xf32>
    %67 = vector.extract_strided_slice %66 {offsets = [0, 0], sizes = [16, 128], strides = [1, 1]} : vector<32x128xf32> to vector<16x128xf32>
    %68 = vector.extract_strided_slice %66 {offsets = [16, 0], sizes = [16, 128], strides = [1, 1]} : vector<32x128xf32> to vector<16x128xf32>
    %cst_27 = arith.constant 5.000000e-01 : f32
    %69 = vector.broadcast %cst_27 : f32 to vector<16x128xf32>
    %70 = arith.mulf %69, %68 : vector<16x128xf32>
    %71 = math.tanh %70 : vector<16x128xf32>
    %cst_28 = arith.constant 1.000000e+00 : f32
    %72 = vector.broadcast %cst_28 : f32 to vector<16x128xf32>
    %73 = arith.addf %71, %72 : vector<16x128xf32>
    %cst_29 = arith.constant 5.000000e-01 : f32
    %74 = vector.broadcast %cst_29 : f32 to vector<16x128xf32>
    %75 = arith.mulf %74, %73 : vector<16x128xf32>
    %76 = arith.mulf %67, %75 : vector<16x128xf32>
    %77 = arith.addf %40, %76 : vector<16x128xf32>
    %cst_30 = arith.constant 0.707106769 : f32
    %78 = vector.broadcast %cst_30 : f32 to vector<16x128xf32>
    %79 = arith.mulf %77, %78 : vector<16x128xf32>
    %80 = tpu.transpose %79, [1, 0] : vector<16x128xf32> -> vector<128x16xf32>
    %c0_31 = arith.constant 0 : index
    %c0_32 = arith.constant 0 : index
    %81 = vector.load %arg4[%c0_31, %c0_32] : memref<128x16xf32, #tpu.memory_space<vmem>>, vector<128x16xf32>
    tpu.vector_store %arg4[%c0_31, %c0_32], %80 {strides = array<i32>} : memref<128x16xf32, #tpu.memory_space<vmem>>, vector<128x16xf32>,
    return
  }
  func.func @transform_0(%arg0: i32) -> (i32, i32) {
    %c0_i32 = arith.constant 0 : i32
    %c0_i32_0 = arith.constant 0 : i32
    return %arg0, %c0_i32 : i32, i32
  }
  func.func @transform_1(%arg0: i32) -> (i32, i32, i32) {
    %c0_i32 = arith.constant 0 : i32
    %c0_i32_0 = arith.constant 0 : i32
    %c0_i32_1 = arith.constant 0 : i32
    %c0_i32_2 = arith.constant 0 : i32
    return %c0_i32, %c0_i32_0, %c0_i32_1 : i32, i32, i32
  }
  func.func @transform_2(%arg0: i32) -> (i32, i32) {
    %c0_i32 = arith.constant 0 : i32
    %c0_i32_0 = arith.constant 0 : i32
    %c0_i32_1 = arith.constant 0 : i32
    return %c0_i32, %c0_i32_0 : i32, i32
  }
  func.func @transform_3(%arg0: i32) -> (i32, i32) {
    %c0_i32 = arith.constant 0 : i32
    %c0_i32_0 = arith.constant 0 : i32
    return %arg0, %c0_i32 : i32, i32
  }
}

</mosaic_0001>

<bundles_post_ra>
// kernel: tpu_custom_call.1
= control target key start
LH: loop header
LB: loop body
LE: loop exit
PB: predicated region body
PF: predicated region fallthrough
CT: control target
= control target key end

     0   :  { %vm70_vm0 = vcmask 130048   ;;  %v607_v59 = vmov 0   ;;  %s608_s26 = smov 1   ;;  %s902_s0 = inlined_call_operand.vmem [shape: f32[128,16], index: 0, kind: input, shape index: {}]   ;;  %s903_s1 = inlined_call_operand.vmem [shape: f32[2,32,16], index: 1, kind: input, shape index: {}]   ;;  %s904_s2 = inlined_call_operand.vmem [shape: f32[32,4], index: 2, kind: input, shape index: {}]   ;;  %s905_s3 = inlined_call_operand.vmem [shape: f32[128,16], index: 3, kind: output, shape index: {}]  }
   0x1   :  { %v14_v0 = vld [vmem:[%s902_s0] sm:$0xff]  ;;  %v15_v1 = vld [vmem:[%s902_s0 + $0x8] sm:$0xff]  ;;  %v16_v2 = vld [vmem:[%s902_s0 + $0x10] sm:$0xff]  ;;  %572 = vset.pattern.permute.xlu2 %v607_v59  ;;  %573 = vset.pattern.permute.xlu1 %v607_v59 }
   0x2   :  { %30 = vxpose.xlu0.b32.start [1/16] (narrow) %v14_v0, 16  ;;  %v17_v3 = vld [vmem:[%s902_s0 + $0x18] sm:$0xff]  ;;  %v18_v4 = vld [vmem:[%s902_s0 + $0x20] sm:$0xff]  ;;  %v19_v5 = vld [vmem:[%s902_s0 + $0x28] sm:$0xff] }
   0x3   :  { %v20_v6 = vld [vmem:[%s902_s0 + $0x30] sm:$0xff]  ;;  %v21_v7 = vld [vmem:[%s902_s0 + $0x38] sm:$0xff]  ;;  %v22_v8 = vld [vmem:[%s902_s0 + $0x40] sm:$0xff] }
   0x4   :  { %v23_v9 = vld [vmem:[%s902_s0 + $0x48] sm:$0xff]  ;;  %v24_v10 = vld [vmem:[%s902_s0 + $0x50] sm:$0xff]  ;;  %v25_v11 = vld [vmem:[%s902_s0 + $0x58] sm:$0xff] }
   0x5   :  { %v26_v12 = vld [vmem:[%s902_s0 + $0x60] sm:$0xff]  ;;  %v27_v13 = vld [vmem:[%s902_s0 + $0x68] sm:$0xff]  ;;  %v28_v14 = vld [vmem:[%s902_s0 + $0x70] sm:$0xff] }
   0x6   :  { %v29_v15 = vld [vmem:[%s902_s0 + $0x78] sm:$0xff]  ;;  %v64_v18 = vld [vmem:[%s903_s1 + $0x10] sm:$0xff]  ;;  %v62_v19 = vld [vmem:[%s903_s1] sm:$0xff] }
   0x7   :  { %v65_v20 = vld [vmem:[%s903_s1 + $0x18] sm:$0xff]  ;;  %v63_v21 = vld [vmem:[%s903_s1 + $0x8] sm:$0xff]  ;;  %v733_v57 = vld [vmem:[%s904_s2 + $0x10] sm:$0xff] }
   0xa   :  { %31 = vxpose.xlu0.b32.cont [2/16] (narrow) %v15_v1, 16 }
  0x12   :  { %32 = vxpose.xlu0.b32.cont [3/16] (narrow) %v16_v2, 16 }
  0x1a   :  { %33 = vxpose.xlu0.b32.cont [4/16] (narrow) %v17_v3, 16 }
  0x22   :  { %34 = vxpose.xlu0.b32.cont [5/16] (narrow) %v18_v4, 16 }
  0x2a   :  { %35 = vxpose.xlu0.b32.cont [6/16] (narrow) %v19_v5, 16 }
  0x32   :  { %36 = vxpose.xlu0.b32.cont [7/16] (narrow) %v20_v6, 16 }
  0x3a   :  { %37 = vxpose.xlu0.b32.cont [8/16] (narrow) %v21_v7, 16 }
  0x42   :  { %38 = vxpose.xlu0.b32.cont [9/16] (narrow) %v22_v8, 16 }
  0x4a   :  { %39 = vxpose.xlu0.b32.cont [10/16] (narrow) %v23_v9, 16 }
  0x52   :  { %40 = vxpose.xlu0.b32.cont [11/16] (narrow) %v24_v10, 16  ;;  %v744_v10 = vld [vmem:[%s904_s2 + $0x18] sm:$0xff] }
  0x5a   :  { %41 = vxpose.xlu0.b32.cont [12/16] (narrow) %v25_v11, 16 }
  0x62   :  { %42 = vxpose.xlu0.b32.cont [13/16] (narrow) %v26_v12, 16 }
  0x6a   :  { %43 = vxpose.xlu0.b32.cont [14/16] (narrow) %v27_v13, 16 }
  0x72   :  { %44 = vxpose.xlu0.b32.cont [15/16] (narrow) %v28_v14, 16 }
  0x7a   :  { %45 = vxpose.xlu0.b32.end [16/16] (narrow) %v29_v15, 16 }
  0xa6   :  { %v680_v16 = vpop.trf.xlu0 }
  0xae   :  { %v682_v17 = vpop.trf.xlu0 }
  0xaf   :  { %97 = vmatpush.msra.mxu0 %v682_v17  ;;  %562 = vmatpush.msra.mxu2 %v682_v17 }
  0xb1   :  { %98 = vmatpush.msra.mxu0 %v680_v16  ;;  %563 = vmatpush.msra.mxu2 %v680_v16 }
  0xb2   :  { %552 = vmatmul.msk.f32.vlgmr.msra.gmra.mxu2 %vm70_vm0, %v64_v18  ;;  %550 = vmatmul.msk.f32.vlgmr.msra.gmra.mxu0 %vm70_vm0, %v62_v19 }
  0xba   :  { %553 = vmatmul.msk.f32.gmra.mxu2 %vm70_vm0, %v65_v20  ;;  %551 = vmatmul.msk.f32.gmra.mxu0 %vm70_vm0, %v63_v21 }
 0x12f   :  { %v709_v24 = vpop.f32.mrf.mxu0 }
 0x130   :  { %v124_v29 = vmul.f32 %v709_v24, %v709_v24 }
 0x135   :  { %v704_v22 = vpop.f32.mrf.mxu2 }
 0x136   :  { %116 = vadd.xlane.f32.xlu1 %v704_v22  ;;  %v126_v23 = vmul.f32 %v704_v22, %v704_v22 }
 0x137   :  { %v716_v27 = vpop.f32.mrf.mxu0 }
 0x138   :  { %132 = vadd.xlane.f32.xlu2 %v126_v23  ;;  %v125_v28 = vmul.f32 %v716_v27, %v716_v27 }
 0x13d   :  { %v711_v25 = vpop.f32.mrf.mxu2 }
 0x13e   :  { %118 = vadd.xlane.f32.xlu1 %v711_v25  ;;  %v127_v26 = vmul.f32 %v711_v25, %v711_v25 }
 0x140   :  { %134 = vadd.xlane.f32.xlu2 %v127_v26 }
 0x146   :  { %114 = vadd.xlane.f32.xlu1 %v716_v27 }
 0x148   :  { %112 = vadd.xlane.f32.xlu2 %v709_v24 }
 0x14e   :  { %130 = vadd.xlane.f32.xlu1 %v125_v28 }
 0x150   :  { %128 = vadd.xlane.f32.xlu2 %v124_v29 }
 0x1a9   :  { %v117_v30 = vpop.xlane.xlu1 %116 }
 0x1aa   :  { %v122_v31 = vmul.f32 0.0078125, %v117_v30 }
 0x1ab   :  { %v133_v32 = vpop.xlane.xlu2 %132 }
 0x1ac   :  { %v142_v33 = vmul.f32 %v122_v31, %v122_v31  ;;  %v138_v34 = vmul.f32 0.0078125, %v133_v32 }
 0x1ae   :  { %v146_v35 = vsub.f32 %v138_v34, %v142_v33  ;;  %v756_v34 = vld [vmem:[%s904_s2] sm:$0xff] }
 0x1b0   :  { %v150_v36 = vadd.f32 1e-05, %v146_v35 }
 0x1b1   :  { %v119_v37 = vpop.xlane.xlu1 %118 }
 0x1b2   :  { %583 = vrsqrt.f32 %v150_v36  ;;  %v123_v38 = vmul.f32 0.0078125, %v119_v37  ;;  %vm178_vm2 = vweird.f32 %v150_v36 }
 0x1b3   :  { %v135_v39 = vpop.xlane.xlu2 %134 }
 0x1b4   :  { %v143_v40 = vmul.f32 %v123_v38, %v123_v38  ;;  %v139_v41 = vmul.f32 0.0078125, %v135_v39 }
 0x1b6   :  { %v147_v42 = vsub.f32 %v139_v41, %v143_v40  ;;  %v609_v41 = vmov 1  }
 0x1b8   :  { %v584_v43 = vpop.eup %583  ;;  %v151_v44 = vadd.f32 1e-05, %v147_v42 }
 0x1b9   :  { %v173_v45 = vmul.f32 %v584_v43, %v150_v36  ;;  %v115_v46 = vpop.xlane.xlu1 %114  ;;  %vm179_vm1 = vweird.f32 %v584_v43 }
 0x1ba   :  { %585 = vrsqrt.f32 %v151_v44  ;;  %v724_v49 = vmul.f32 0.0078125, %v115_v46  ;;  %vm180_vm3 = vmor %vm178_vm2, %vm179_vm1  ;;  %vm188_vm5 = vweird.f32 %v151_v44 }
 0x1bb   :  { %v174_v47 = vmul.f32 %v584_v43, %v173_v45  ;;  %v113_v48 = vpop.xlane.xlu2 %112 }
 0x1bc   :  { %v141_v53 = vmul.f32 %v724_v49, %v724_v49  ;;  %v728_v54 = vmul.f32 0.0078125, %v113_v48 }
 0x1bd   :  { %v175_v50 = vmul.f32 0.5, %v174_v47 }
 0x1be   :  { %v140_v0 = vmul.f32 %v728_v54, %v728_v54 }
 0x1bf   :  { %v176_v51 = vsub.f32 1.5, %v175_v50 }
 0x1c0   :  { %v586_v52 = vpop.eup %585 }
 0x1c1   :  { %v183_v55 = vmul.f32 %v586_v52, %v151_v44  ;;  %v131_v56 = vpop.xlane.xlu1 %130  ;;  %v177_v58 = vmul.f32 %v584_v43, %v176_v51  ;;  %vm189_vm4 = vweird.f32 %v586_v52 }
 0x1c2   :  { %v137_v60 = vmul.f32 0.0078125, %v131_v56  ;;  %vm190_vm6 = vmor %vm188_vm5, %vm189_vm4 }
 0x1c3   :  { %v184_v61 = vmul.f32 %v586_v52, %v183_v55  ;;  %v129_v62 = vpop.xlane.xlu2 %128  ;;  %v181_v63 = vsel %vm180_vm3, %v584_v43, %v177_v58 }
 0x1c4   :  { %v145_v1 = vsub.f32 %v137_v60, %v141_v53  ;;  %v136_v2 = vmul.f32 0.0078125, %v129_v62  ;;  %v194_v3 = vmul.f32 %v181_v63, %v733_v57 }
 0x1c5   :  { %v185_v4 = vmul.f32 0.5, %v184_v61 }
 0x1c6   :  { %v149_v5 = vadd.f32 1e-05, %v145_v1  ;;  %v144_v6 = vsub.f32 %v136_v2, %v140_v0  ;;  %v198_v7 = vmul.f32 %v194_v3, %v122_v31  ;;  %v751_v31 = vld [vmem:[%s904_s2 + $0x8] sm:$0xff] }
 0x1c7   :  { %v186_v8 = vsub.f32 1.5, %v185_v4 }
 0x1c8   :  { %587 = vrsqrt.f32 %v149_v5  ;;  %v148_v9 = vadd.f32 1e-05, %v144_v6  ;;  %208 = vrot.lane.b32.xlu2 %v198_v7, %s608_s26  ;;  %vm168_vm7 = vweird.f32 %v149_v5 }
 0x1c9   :  { %v187_v11 = vmul.f32 %v586_v52, %v186_v8 }
 0x1ca   :  { %589 = vrsqrt.f32 %v148_v9  ;;  %vm158_vm11 = vweird.f32 %v148_v9 }
 0x1cb   :  { %v191_v12 = vsel %vm190_vm6, %v586_v52, %v187_v11 }
 0x1cc   :  { %v195_v13 = vmul.f32 %v191_v12, %v744_v10 }
 0x1ce   :  { %v588_v14 = vpop.eup %587  ;;  %v199_v15 = vmul.f32 %v195_v13, %v123_v38 }
 0x1cf   :  { %v163_v18 = vmul.f32 %v588_v14, %v149_v5  ;;  %vm169_vm8 = vweird.f32 %v588_v14 }
 0x1d0   :  { %v590_v19 = vpop.eup %589  ;;  %210 = vrot.lane.b32.xlu1 %v199_v15, %s608_s26  ;;  %vm170_vm9 = vmor %vm168_vm7, %vm169_vm8  ;;  %v554_v15 = vld [vmem:[%s903_s1 + $0x20] sm:$0xff] }
 0x1d1   :  { %v164_v20 = vmul.f32 %v588_v14, %v163_v18  ;;  %v153_v21 = vmul.f32 %v590_v19, %v148_v9  ;;  %vm159_vm10 = vweird.f32 %v590_v19 }
 0x1d2   :  { %vm160_vm12 = vmor %vm158_vm11, %vm159_vm10 }
 0x1d3   :  { %v165_v23 = vmul.f32 0.5, %v164_v20  ;;  %v154_v26 = vmul.f32 %v590_v19, %v153_v21 }
 0x1d5   :  { %v166_v28 = vsub.f32 1.5, %v165_v23  ;;  %v155_v29 = vmul.f32 0.5, %v154_v26 }
 0x1d7   :  { %v156_v30 = vsub.f32 1.5, %v155_v29  ;;  %v167_v32 = vmul.f32 %v588_v14, %v166_v28 }
 0x1d9   :  { %v171_v33 = vsel %vm170_vm9, %v588_v14, %v167_v32  ;;  %v157_v35 = vmul.f32 %v590_v19, %v156_v30  ;;  %v556_v14 = vld [vmem:[%s903_s1 + $0x30] sm:$0xff] }
 0x1da   :  { %v193_v36 = vmul.f32 %v171_v33, %v751_v31 }
 0x1db   :  { %v161_v37 = vsel %vm160_vm12, %v590_v19, %v157_v35 }
 0x1dc   :  { %v197_v38 = vmul.f32 %v193_v36, %v724_v49  ;;  %v192_v39 = vmul.f32 %v161_v37, %v756_v34 }
 0x1de   :  { %206 = vrot.lane.b32.xlu2 %v197_v38, %s608_s26  ;;  %v196_v40 = vmul.f32 %v192_v39, %v728_v54 }
 0x1e0   :  { %204 = vrot.lane.b32.xlu1 %v196_v40, %s608_s26 }
 0x1e6   :  { %237 = vperm.xlu2 %572, %v195_v13  }
 0x1e8   :  { %232 = vperm.xlu1 %573, %v194_v3  }
 0x1ee   :  { %575 = vset.pattern.permute.xlu2 %v609_v41 }
 0x1f0   :  { %574 = vset.pattern.permute.xlu1 %v609_v41 }
 0x222   :  { %v209_v42 = vpop.permute.xlu2 %208 }
 0x223   :  { %v218_v43 = vsub.f32 %v733_v57, %v209_v42 }
 0x225   :  { %256 = vperm.xlu1 %574, %v218_v43  }
 0x22d   :  { %577 = vset.pattern.permute.xlu1 %v607_v59 }
 0x22e   :  { %222 = vperm.xlu1 %577, %v192_v39  }
 0x236   :  { %579 = vset.pattern.permute.xlu1 %v609_v41 }
 0x238   :  { %v207_v48 = vpop.permute.xlu2 %206 }
 0x239   :  { %v217_v49 = vsub.f32 %v751_v31, %v207_v48 }
 0x240   :  { %v238_v50 = vpop.permute.xlu2 %237 }
 0x241   :  { %v243_v51 = vmul.f32 %v238_v50, %v711_v25  ;;  %v610_v50 = vmov 2  }
 0x242   :  { %v211_v44 = vpop.permute.xlu1 %210 }
 0x243   :  { %v219_v45 = vsub.f32 %v744_v10, %v211_v44 }
 0x245   :  { %261 = vperm.xlu2 %575, %v219_v45  }
 0x24d   :  { %576 = vset.pattern.permute.xlu2 %v607_v59 }
 0x24e   :  { %227 = vperm.xlu2 %576, %v193_v36  }
 0x252   :  { %v205_v46 = vpop.permute.xlu1 %204 }
 0x253   :  { %v216_v47 = vsub.f32 %v756_v34, %v205_v46 }
 0x255   :  { %246 = vperm.xlu1 %579, %v216_v47  }
 0x256   :  { %578 = vset.pattern.permute.xlu2 %v609_v41 }
 0x257   :  { %251 = vperm.xlu2 %578, %v217_v49  }
 0x25a   :  { %v233_v55 = vpop.permute.xlu1 %232 }
 0x25b   :  { %v242_v62 = vmul.f32 %v233_v55, %v704_v22 }
 0x25d   :  { %580 = vset.pattern.permute.xlu1 %v610_v50 }
 0x297   :  { %v257_v60 = vpop.permute.xlu1 %256 }
 0x298   :  { %v266_v2 = vadd.f32 %v257_v60, %v242_v62 }
 0x29a   :  { %v268_v4 = vmul.f32 0.5, %v266_v2 }
 0x29f   :  { %v262_v52 = vpop.permute.xlu2 %261 }
 0x2a0   :  { %v267_v53 = vadd.f32 %v262_v52, %v243_v51  ;;  %v223_v6 = vpop.permute.xlu1 %222 }
 0x2a1   :  { %v240_v22 = vmul.f32 %v223_v6, %v709_v24  ;;  %v555_v24 = vld [vmem:[%s903_s1 + $0x28] sm:$0xff] }
 0x2a2   :  { %v269_v54 = vmul.f32 0.5, %v267_v53 }
 0x2a4   :  { %591 = vtanh.f32 %v269_v54 }
 0x2a5   :  { %593 = vtanh.f32 %v268_v4 }
 0x2a8   :  { %v228_v56 = vpop.permute.xlu2 %227 }
 0x2a9   :  { %v241_v61 = vmul.f32 %v228_v56, %v716_v27 }
 0x2aa   :  { %v592_v58 = vpop.eup %591 }
 0x2ab   :  { %v273_v59 = vadd.f32 1.0, %v592_v58  ;;  %v594_v7 = vpop.eup %593 }
 0x2ac   :  { %v272_v27 = vadd.f32 1.0, %v594_v7 }
 0x2ad   :  { %v275_v0 = vmul.f32 0.5, %v273_v59 }
 0x2ae   :  { %v274_v9 = vmul.f32 0.5, %v272_v27 }
 0x2b1   :  { %v252_v63 = vpop.permute.xlu2 %251 }
 0x2b2   :  { %v265_v1 = vadd.f32 %v252_v63, %v241_v61 }
 0x2b4   :  { %v277_v3 = vmul.f32 %v275_v0, %v265_v1 }
 0x2b6   :  { %v279_v25 = vadd.f32 %v277_v3, %v682_v17 }
 0x2b8   :  { %v774_v5 = vmul.f32 0.70710677, %v279_v25 }
 0x2ba   :  { %313 = vmatpush.msra.mxu1 %v774_v5  ;;  %564 = vmatpush.msra.mxu3 %v774_v5 }
 0x2c7   :  { %v247_v8 = vpop.permute.xlu1 %246 }
 0x2c8   :  { %v264_v11 = vadd.f32 %v247_v8, %v240_v22 }
 0x2ca   :  { %v276_v12 = vmul.f32 %v274_v9, %v264_v11 }
 0x2cc   :  { %v278_v13 = vadd.f32 %v276_v12, %v680_v16  ;;  %v557_v16 = vld [vmem:[%s903_s1 + $0x38] sm:$0xff] }
 0x2ce   :  { %v780_v17 = vmul.f32 0.70710677, %v278_v13 }
 0x2d0   :  { %314 = vmatpush.msra.mxu1 %v780_v17  ;;  %565 = vmatpush.msra.mxu3 %v780_v17 }
 0x2d1   :  { %560 = vmatmul.msk.f32.vlgmr.msra.gmra.mxu3 %vm70_vm0, %v556_v14  ;;  %558 = vmatmul.msk.f32.vlgmr.msra.gmra.mxu1 %vm70_vm0, %v554_v15 }
 0x2d9   :  { %561 = vmatmul.msk.f32.gmra.mxu3 %vm70_vm0, %v557_v16  ;;  %559 = vmatmul.msk.f32.gmra.mxu1 %vm70_vm0, %v555_v24 }
 0x34e   :  { %v805_v20 = vpop.f32.mrf.mxu1 }
 0x34f   :  { %v340_v26 = vmul.f32 %v805_v20, %v805_v20 }
 0x354   :  { %v800_v18 = vpop.f32.mrf.mxu3 }
 0x355   :  { %332 = vadd.xlane.f32.xlu2 %v800_v18  ;;  %v342_v19 = vmul.f32 %v800_v18, %v800_v18 }
 0x356   :  { %v815_v28 = vpop.f32.mrf.mxu1 }
 0x357   :  { %348 = vadd.xlane.f32.xlu1 %v342_v19  ;;  %v341_v29 = vmul.f32 %v815_v28, %v815_v28 }
 0x35c   :  { %v807_v21 = vpop.f32.mrf.mxu3 }
 0x35d   :  { %334 = vadd.xlane.f32.xlu0 %v807_v21  ;;  %v343_v23 = vmul.f32 %v807_v21, %v807_v21 }
 0x35f   :  { %350 = vadd.xlane.f32.xlu2 %v343_v23  ;;  %328 = vadd.xlane.f32.xlu1 %v805_v20 }
 0x367   :  { %344 = vadd.xlane.f32.xlu2 %v340_v26  ;;  %330 = vadd.xlane.f32.xlu1 %v815_v28 }
 0x36f   :  { %346 = vadd.xlane.f32.xlu2 %v341_v29 }
 0x3c8   :  { %v333_v30 = vpop.xlane.xlu2 %332 }
 0x3c9   :  { %v338_v32 = vmul.f32 0.0078125, %v333_v30 }
 0x3ca   :  { %v349_v33 = vpop.xlane.xlu1 %348 }
 0x3cb   :  { %v358_v35 = vmul.f32 %v338_v32, %v338_v32  ;;  %v354_v36 = vmul.f32 0.0078125, %v349_v33 }
 0x3cd   :  { %v362_v37 = vsub.f32 %v354_v36, %v358_v35 }
 0x3cf   :  { %v366_v38 = vadd.f32 1e-05, %v362_v37 }
 0x3d0   :  { %v335_v39 = vpop.xlane.xlu0 %334 }
 0x3d1   :  { %595 = vrsqrt.f32 %v366_v38  ;;  %v339_v40 = vmul.f32 0.0078125, %v335_v39  ;;  %vm394_vm14 = vweird.f32 %v366_v38 }
 0x3d2   :  { %v351_v41 = vpop.xlane.xlu2 %350  ;;  %v329_v42 = vpop.xlane.xlu1 %328 }
 0x3d3   :  { %v359_v43 = vmul.f32 %v339_v40, %v339_v40  ;;  %v355_v44 = vmul.f32 0.0078125, %v351_v41  ;;  %v336_v46 = vmul.f32 0.0078125, %v329_v42 }
 0x3d5   :  { %v363_v45 = vsub.f32 %v355_v44, %v359_v43  ;;  %v356_v51 = vmul.f32 %v336_v46, %v336_v46  ;;  %v611_v43 = vmov 3  }
 0x3d6   :  { %581 = vset.pattern.permute.xlu2 %v611_v43  ;;  %582 = vset.pattern.permute.xlu0 %v611_v43 }
 0x3d7   :  { %v596_v47 = vpop.eup %595  ;;  %v367_v48 = vadd.f32 1e-05, %v363_v45 }
 0x3d8   :  { %v389_v49 = vmul.f32 %v596_v47, %v366_v38  ;;  %vm395_vm13 = vweird.f32 %v596_v47 }
 0x3d9   :  { %597 = vrsqrt.f32 %v367_v48  ;;  %vm396_vm15 = vmor %vm394_vm14, %vm395_vm13  ;;  %vm404_vm2 = vweird.f32 %v367_v48 }
 0x3da   :  { %v390_v52 = vmul.f32 %v596_v47, %v389_v49  ;;  %v345_v53 = vpop.xlane.xlu2 %344  ;;  %v331_v54 = vpop.xlane.xlu1 %330 }
 0x3db   :  { %v352_v55 = vmul.f32 0.0078125, %v345_v53  ;;  %v337_v59 = vmul.f32 0.0078125, %v331_v54 }
 0x3dc   :  { %v391_v56 = vmul.f32 0.5, %v390_v52 }
 0x3dd   :  { %v360_v58 = vsub.f32 %v352_v55, %v356_v51  ;;  %v357_v1 = vmul.f32 %v337_v59, %v337_v59 }
 0x3de   :  { %v392_v60 = vsub.f32 1.5, %v391_v56 }
 0x3df   :  { %v598_v61 = vpop.eup %597  ;;  %v364_v62 = vadd.f32 1e-05, %v360_v58 }
 0x3e0   :  { %v399_v63 = vmul.f32 %v598_v61, %v367_v48  ;;  %v393_v0 = vmul.f32 %v596_v47, %v392_v60  ;;  %vm405_vm1 = vweird.f32 %v598_v61 }
 0x3e1   :  { %599 = vrsqrt.f32 %v364_v62  ;;  %vm406_vm3 = vmor %vm404_vm2, %vm405_vm1  ;;  %vm374_vm5 = vweird.f32 %v364_v62 }
 0x3e2   :  { %v400_v2 = vmul.f32 %v598_v61, %v399_v63  ;;  %v347_v3 = vpop.xlane.xlu2 %346  ;;  %v397_v25 = vsel %vm396_vm15, %v596_v47, %v393_v0 }
 0x3e3   :  { %v353_v4 = vmul.f32 0.0078125, %v347_v3  ;;  %v410_v6 = vmul.f32 %v397_v25, %v733_v57 }
 0x3e4   :  { %v401_v7 = vmul.f32 0.5, %v400_v2 }
 0x3e5   :  { %v361_v27 = vsub.f32 %v353_v4, %v357_v1  ;;  %v414_v22 = vmul.f32 %v410_v6, %v338_v32 }
 0x3e6   :  { %v402_v8 = vsub.f32 1.5, %v401_v7 }
 0x3e7   :  { %v600_v9 = vpop.eup %599  ;;  %v365_v11 = vadd.f32 1e-05, %v361_v27  ;;  %424 = vrot.lane.b32.xlu1 %v414_v22, %s608_s26 }
 0x3e8   :  { %v369_v12 = vmul.f32 %v600_v9, %v364_v62  ;;  %v403_v13 = vmul.f32 %v598_v61, %v402_v8  ;;  %vm375_vm4 = vweird.f32 %v600_v9 }
 0x3e9   :  { %601 = vrsqrt.f32 %v365_v11  ;;  %vm376_vm6 = vmor %vm374_vm5, %vm375_vm4  ;;  %vm384_vm7 = vweird.f32 %v365_v11 }
 0x3ea   :  { %v370_v14 = vmul.f32 %v600_v9, %v369_v12  ;;  %v407_v15 = vsel %vm406_vm3, %v598_v61, %v403_v13 }
 0x3eb   :  { %v411_v16 = vmul.f32 %v407_v15, %v744_v10 }
 0x3ec   :  { %v371_v24 = vmul.f32 0.5, %v370_v14 }
 0x3ed   :  { %v415_v19 = vmul.f32 %v411_v16, %v339_v40 }
 0x3ee   :  { %v372_v23 = vsub.f32 1.5, %v371_v24 }
 0x3ef   :  { %v602_v26 = vpop.eup %601  ;;  %426 = vrot.lane.b32.xlu2 %v415_v19, %s608_s26 }
 0x3f0   :  { %v379_v29 = vmul.f32 %v602_v26, %v365_v11  ;;  %v373_v30 = vmul.f32 %v600_v9, %v372_v23  ;;  %vm385_vm8 = vweird.f32 %v602_v26 }
 0x3f1   :  { %vm386_vm9 = vmor %vm384_vm7, %vm385_vm8 }
 0x3f2   :  { %v380_v32 = vmul.f32 %v602_v26, %v379_v29  ;;  %v377_v33 = vsel %vm376_vm6, %v600_v9, %v373_v30 }
 0x3f3   :  { %v408_v35 = vmul.f32 %v377_v33, %v756_v34 }
 0x3f4   :  { %v381_v36 = vmul.f32 0.5, %v380_v32 }
 0x3f5   :  { %v412_v37 = vmul.f32 %v408_v35, %v336_v46 }
 0x3f6   :  { %v382_v38 = vsub.f32 1.5, %v381_v36 }
 0x3f7   :  { %420 = vrot.lane.b32.xlu1 %v412_v37, %s608_s26 }
 0x3f8   :  { %v383_v39 = vmul.f32 %v602_v26, %v382_v38 }
 0x3fa   :  { %v387_v40 = vsel %vm386_vm9, %v602_v26, %v383_v39 }
 0x3fb   :  { %v409_v41 = vmul.f32 %v387_v40, %v751_v31 }
 0x3fd   :  { %v413_v42 = vmul.f32 %v409_v41, %v337_v59 }
 0x3ff   :  { %448 = vperm.xlu1 %580, %v410_v6   ;;  %422 = vrot.lane.b32.xlu2 %v413_v42, %s608_s26 }
 0x407   :  { %453 = vperm.xlu1 %580, %v411_v16  }
 0x40f   :  { %438 = vperm.xlu1 %580, %v408_v35  }
 0x417   :  { %443 = vperm.xlu1 %580, %v409_v41  }
 0x449   :  { %v427_v46 = vpop.permute.xlu2 %426 }
 0x44a   :  { %v435_v47 = vsub.f32 %v744_v10, %v427_v46 }
 0x459   :  { %v425_v44 = vpop.permute.xlu1 %424  ;;  %v423_v50 = vpop.permute.xlu2 %422 }
 0x45a   :  { %v434_v45 = vsub.f32 %v733_v57, %v425_v44  ;;  %v433_v51 = vsub.f32 %v751_v31, %v423_v50 }
 0x45c   :  { %472 = vperm.xlu2 %581, %v434_v45  }
 0x464   :  { %477 = vperm.xlu2 %581, %v435_v47  }
 0x469   :  { %v421_v48 = vpop.permute.xlu1 %420 }
 0x46a   :  { %v432_v49 = vsub.f32 %v756_v34, %v421_v48 }
 0x46c   :  { %462 = vperm.xlu2 %581, %v432_v49  }
 0x471   :  { %v449_v52 = vpop.permute.xlu1 %448 }
 0x472   :  { %v458_v53 = vmul.f32 %v449_v52, %v800_v18 }
 0x474   :  { %467 = vperm.xlu2 %581, %v433_v51  }
 0x479   :  { %v454_v54 = vpop.permute.xlu1 %453 }
 0x47a   :  { %v459_v58 = vmul.f32 %v454_v54, %v807_v21 }
 0x481   :  { %v439_v60 = vpop.permute.xlu1 %438 }
 0x482   :  { %v456_v31 = vmul.f32 %v439_v60, %v805_v20 }
 0x489   :  { %v444_v3 = vpop.permute.xlu1 %443 }
 0x48a   :  { %v457_v21 = vmul.f32 %v444_v3, %v815_v28 }
 0x4b6   :  { %v473_v55 = vpop.permute.xlu2 %472 }
 0x4b7   :  { %v482_v56 = vadd.f32 %v473_v55, %v458_v53 }
 0x4b9   :  { %v484_v57 = vmul.f32 0.5, %v482_v56 }
 0x4bb   :  { %603 = vtanh.f32 %v484_v57 }
 0x4be   :  { %v478_v10 = vpop.permute.xlu2 %477 }
 0x4bf   :  { %v483_v59 = vadd.f32 %v478_v10, %v459_v58 }
 0x4c1   :  { %v604_v61 = vpop.eup %603  ;;  %v485_v34 = vmul.f32 0.5, %v483_v59 }
 0x4c2   :  { %v488_v62 = vadd.f32 1.0, %v604_v61 }
 0x4c3   :  { %605 = vtanh.f32 %v485_v34 }
 0x4c4   :  { %v490_v0 = vmul.f32 0.5, %v488_v62 }
 0x4c6   :  { %v463_v63 = vpop.permute.xlu2 %462 }
 0x4c7   :  { %v480_v1 = vadd.f32 %v463_v63, %v456_v31 }
 0x4c9   :  { %v606_v18 = vpop.eup %605  ;;  %v492_v2 = vmul.f32 %v490_v0, %v480_v1 }
 0x4ca   :  { %v489_v25 = vadd.f32 1.0, %v606_v18 }
 0x4cb   :  { %v494_v4 = vadd.f32 %v492_v2, %v780_v17 }
 0x4cc   :  { %v491_v27 = vmul.f32 0.5, %v489_v25 }
 0x4cd   :  { %v496_v6 = vmul.f32 0.70710677, %v494_v4 }
 0x4ce   :  { %v468_v7 = vpop.permute.xlu2 %467 }
 0x4cf   :  { %v481_v22 = vadd.f32 %v468_v7, %v457_v21  ;;  %498 = vxpose.xlu1.b32.start [1/2] (short) %v496_v6, 128 }
 0x4d1   :  { %v493_v8 = vmul.f32 %v491_v27, %v481_v22 }
 0x4d3   :  { %v495_v9 = vadd.f32 %v493_v8, %v774_v5 }
 0x4d5   :  { %v497_v20 = vmul.f32 0.70710677, %v495_v9 }
 0x4d7   :  { %499 = vxpose.xlu1.b32.end [2/2] (short) %v497_v20, 128 }
 0x573   :  { %v514_v11 = vpop.trf.xlu1 }
 0x574   :  { %530 = vst.msk [vmem:[%s905_s3] sm:$0xff] %vm70_vm0, %v514_v11 }
 0x57b   :  { %v515_v12 = vpop.trf.xlu1 }
 0x57c   :  { %531 = vst.msk [vmem:[%s905_s3 + $0x8] sm:$0xff] %vm70_vm0, %v515_v12 }
 0x583   :  { %v516_v17 = vpop.trf.xlu1 }
 0x584   :  { %532 = vst.msk [vmem:[%s905_s3 + $0x10] sm:$0xff] %vm70_vm0, %v516_v17 }
 0x58b   :  { %v517_v5 = vpop.trf.xlu1 }
 0x58c   :  { %533 = vst.msk [vmem:[%s905_s3 + $0x18] sm:$0xff] %vm70_vm0, %v517_v5 }
 0x593   :  { %v518_v28 = vpop.trf.xlu1 }
 0x594   :  { %534 = vst.msk [vmem:[%s905_s3 + $0x20] sm:$0xff] %vm70_vm0, %v518_v28 }
 0x59b   :  { %v519_v13 = vpop.trf.xlu1 }
 0x59c   :  { %535 = vst.msk [vmem:[%s905_s3 + $0x28] sm:$0xff] %vm70_vm0, %v519_v13 }
 0x5a3   :  { %v520_v14 = vpop.trf.xlu1 }
 0x5a4   :  { %536 = vst.msk [vmem:[%s905_s3 + $0x30] sm:$0xff] %vm70_vm0, %v520_v14 }
 0x5ab   :  { %v521_v15 = vpop.trf.xlu1 }
 0x5ac   :  { %537 = vst.msk [vmem:[%s905_s3 + $0x38] sm:$0xff] %vm70_vm0, %v521_v15 }
 0x5b3   :  { %v522_v16 = vpop.trf.xlu1 }
 0x5b4   :  { %538 = vst.msk [vmem:[%s905_s3 + $0x40] sm:$0xff] %vm70_vm0, %v522_v16 }
 0x5bb   :  { %v523_v24 = vpop.trf.xlu1 }
 0x5bc   :  { %539 = vst.msk [vmem:[%s905_s3 + $0x48] sm:$0xff] %vm70_vm0, %v523_v24 }
 0x5c3   :  { %v524_v19 = vpop.trf.xlu1 }
 0x5c4   :  { %540 = vst.msk [vmem:[%s905_s3 + $0x50] sm:$0xff] %vm70_vm0, %v524_v19 }
 0x5cb   :  { %v525_v23 = vpop.trf.xlu1 }
 0x5cc   :  { %541 = vst.msk [vmem:[%s905_s3 + $0x58] sm:$0xff] %vm70_vm0, %v525_v23 }
 0x5d3   :  { %v526_v26 = vpop.trf.xlu1 }
 0x5d4   :  { %542 = vst.msk [vmem:[%s905_s3 + $0x60] sm:$0xff] %vm70_vm0, %v526_v26 }
 0x5db   :  { %v527_v29 = vpop.trf.xlu1 }
 0x5dc   :  { %543 = vst.msk [vmem:[%s905_s3 + $0x68] sm:$0xff] %vm70_vm0, %v527_v29 }
 0x5e3   :  { %v528_v30 = vpop.trf.xlu1 }
 0x5e4   :  { %544 = vst.msk [vmem:[%s905_s3 + $0x70] sm:$0xff] %vm70_vm0, %v528_v30 }
 0x5eb   :  { %v529_v32 = vpop.trf.xlu1 }
 0x5ec   :  { %545 = vst.msk [vmem:[%s905_s3 + $0x78] sm:$0xff] %vm70_vm0, %v529_v32 }

</bundles_post_ra>
